<compile_context>
chip_gen: v7x
topology: tpu7x:2x2x1
jax: 0.10.0
libtpu: 0.0.40
codegen_flags: <defaults>
</compile_context>

<pallas_src>
import jax
import jax.numpy as jnp
from jax.experimental import pallas as pl
from jax.experimental.pallas import tpu as pltpu


_LANES = 128        # TPU vreg lane width
_TM_P_MAX = 16384   # max packed rows per grid tile (8 MiB f32 / 4 MiB bf16 x block)
_CS_P = 128         # packed rows per inner chunk (h stays ~16 vregs)


def _make_noise_kernel(tm_p, cs_p):
    """Build a kernel specialized to (tile, chunk) sizes; tm_p % cs_p == 0."""
    assert tm_p % cs_p == 0
    n_chunks = tm_p // cs_p

    def kernel(x_ref, w1_ref, b1_ref, w2t_ref, b2_ref, o_ref):
        # x_ref  : (tm_p, L)   packed input rows (`pack` original rows per row)
        # w1_ref : (L, L)      block-diag first linear weight, bf16 (x @ W form)
        # b1_ref : (1, L)      first bias tiled `pack` times, f32
        # w2t_ref: (pack, L)   block-diag second linear weight, transposed, f32
        # b2_ref : (1,) SMEM   second bias (scalar)
        # o_ref  : (pack, tm_p) lane-dense output, o[j, i] = row pack*i + j
        w1 = w1_ref[...]           # resident for the whole tile (read once)
        b1 = b1_ref[...]
        w2t = w2t_ref[...]
        b2 = b2_ref[0]

        def chunk(c, carry):
            start = pl.multiple_of(c * cs_p, cs_p)
            # bf16 MXU operands, f32 accumulation (MXU-native on v5e/v6e/v7x).
            xc = x_ref[pl.ds(start, cs_p), :].astype(jnp.bfloat16)
            h = jnp.dot(xc, w1, preferred_element_type=jnp.float32)
            h = jnp.maximum(h + b1, 0.0)
            # TODO(synk): training-mode dropout (prng mask) not implemented;
            #             eval-mode dropout is the identity.
            # Linear(d, 1), computed transposed so the result is lane-dense:
            #   zt[j, i] = h_row(pack*i + j) . w2      (A @ B^T MXU pattern)
            zt = jax.lax.dot_general(
                w2t, h, (((1,), (1,)), ((), ())),
                preferred_element_type=jnp.float32)
            zt = zt + b2
            # Softplus with PyTorch semantics (beta=1, threshold=20).
            sp = jnp.where(zt > 20.0, zt, jnp.log1p(jnp.exp(zt)))
            o_ref[:, pl.ds(start, cs_p)] = sp.astype(o_ref.dtype)
            return carry

        # Visible loop (not a Python unroll): bounded live ranges + LLO pipelining.
        jax.lax.fori_loop(0, n_chunks, chunk, 0, unroll=min(4, n_chunks))

    return kernel


@jax.jit
def noise_sampler_forward(x, w1, b1, w2, b2):
    """x: (batch, seq, d) -> stdv: (batch, seq)   (== PyTorch .flatten(1)).

    w1: (d, d) in x @ W form, b1: (d,), w2: (d, 1), b2: (1,).
    """
    batch, seq, d = x.shape
    rows = batch * seq
    out_dtype = x.dtype
    f32 = jnp.float32

    # How many original rows fit in one 128-lane vreg row.
    pack = _LANES // d if (d <= _LANES and _LANES % d == 0) else 1
    lanes = pack * d

    rows_main = (rows // pack) * pack   # kernel slab (no jnp.pad copy of x)
    rows_p = rows_main // pack
    tail = rows - rows_main             # <= pack-1 rows -> pure-JAX epilogue

    x2 = x.reshape(rows, d)

    # Block-diagonal weights (tiny, resident in VMEM, DMA'd once).
    eye = jnp.eye(pack, dtype=f32)
    w1bd = jnp.kron(eye, w1.astype(f32)).astype(jnp.bfloat16)   # (lanes, lanes)
    b1row = jnp.tile(b1.astype(f32), pack)[None, :]             # (1, lanes)
    w2t = jnp.kron(eye, w2.astype(f32)).T                       # (pack, lanes)
    b2s = b2.astype(f32).reshape(1)                             # (1,) SMEM scalar

    pieces = []
    if rows_p > 0:
        # No-op slice when rows % pack == 0 (the common case); free reshape.
        xp = x2[:rows_main].reshape(rows_p, lanes)

        # Tile sizing: big blocks to amortize the ~0.35 us/step overhead, but
        # at least two grid steps for large inputs (v7x: 2 TensorCores).
        cs_p = _CS_P
        half = -(-rows_p // 2)
        tm_p = max(cs_p, min(_TM_P_MAX, -(-half // cs_p) * cs_p))
        num_tiles = -(-rows_p // tm_p)

        x_item = x.dtype.itemsize
        o_item = jnp.dtype(out_dtype).itemsize
        const_bytes = lanes * lanes * 2 + lanes * 4 + pack * lanes * 4 + 4
        x_block = tm_p * lanes * x_item
        o_block = pack * tm_p * o_item
        # Double-buffered blocks + resident weights + headroom.  Only matters on
        # v5e (16 MiB scoped default) when streaming 8 MiB f32 x blocks.
        vmem_limit = int(min(48 << 20,
                             max(16 << 20,
                                 2 * (x_block + o_block + const_bytes) + (2 << 20))))

        cost = pl.CostEstimate(
            flops=2 * rows_main * d * (d + 1),
            transcendentals=2 * rows_main,
            bytes_accessed=rows_main * d * x_item + rows_main * o_item + const_bytes,
        )

        out = pl.pallas_call(
            _make_noise_kernel(tm_p, cs_p),
            out_shape=jax.ShapeDtypeStruct((pack, rows_p), out_dtype),
            grid_spec=pltpu.PrefetchScalarGridSpec(
                num_scalar_prefetch=0,
                grid=(num_tiles,),
                in_specs=[
                    pl.BlockSpec((tm_p, lanes), lambda i: (i, 0)),      # x (streamed)
                    pl.BlockSpec((lanes, lanes), lambda i: (0, 0)),     # W1 block-diag
                    pl.BlockSpec((1, lanes), lambda i: (0, 0)),         # b1 (tiled)
                    pl.BlockSpec((pack, lanes), lambda i: (0, 0)),      # W2^T block-diag
                    pl.BlockSpec(memory_space=pltpu.MemorySpace.SMEM),  # b2 scalar
                ],
                out_specs=pl.BlockSpec((pack, tm_p), lambda i: (0, i)),
            ),
            compiler_params=pltpu.CompilerParams(
                dimension_semantics=("parallel",),
                vmem_limit_bytes=vmem_limit,
            ),
            cost_estimate=cost,
        )(xp, w1bd, b1row, w2t, b2s)

        # Un-interleave: out[j, i] is original row pack*i + j.  The output is
        # ~1/32 of the input bytes, so this transpose/reshape is cheap plumbing.
        pieces.append(out.T.reshape(rows_main))

    if tail:
        # <= pack-1 leftover rows: tiny pure-JAX epilogue using the same bf16
        # operand rounding as the kernel (avoids any full-x pad/copy).
        xt = x2[rows_main:].astype(jnp.bfloat16).astype(f32)
        w1e = w1.astype(f32).astype(jnp.bfloat16).astype(f32)
        ht = jnp.maximum(xt @ w1e + b1.astype(f32), 0.0)
        zt = ht @ w2.astype(f32) + b2.astype(f32)
        spt = jnp.where(zt > 20.0, zt, jnp.log1p(jnp.exp(zt)))
        pieces.append(spt.reshape(tail).astype(out_dtype))

    stdv = pieces[0] if len(pieces) == 1 else jnp.concatenate(pieces)
    return stdv.reshape(batch, seq)


def _reference_forward(x, w1, b1, w2, b2):
    """Pure-JAX f32 reference matching the PyTorch module in eval mode."""
    xf = x.astype(jnp.float32)
    h = jnp.maximum(xf @ w1 + b1, 0.0)
    z = h @ w2 + b2
    sp = jnp.where(z > 20.0, z, jnp.log1p(jnp.exp(z)))
    return sp.reshape(x.shape[0], -1)


def _reference_forward_bf16_operands(x, w1, b1, w2, b2):
    """Reference with the kernel's bf16 MXU-operand rounding (f32 accumulate)."""
    xb = x.astype(jnp.bfloat16).astype(jnp.float32)
    w1b = w1.astype(jnp.bfloat16).astype(jnp.float32)
    h = jnp.maximum(xb @ w1b + b1, 0.0)
    z = h @ w2 + b2
    sp = jnp.where(z > 20.0, z, jnp.log1p(jnp.exp(z)))
    return sp.reshape(x.shape[0], -1)


if __name__ == "__main__":
    key = jax.random.PRNGKey(0)
    kx, kw1, kb1, kw2, kb2, kx2 = jax.random.split(key, 6)

    d = 32
    bound = 1.0 / jnp.sqrt(d)
    w1 = jax.random.uniform(kw1, (d, d), jnp.float32, -bound, bound)
    b1 = jax.random.uniform(kb1, (d,), jnp.float32, -bound, bound)
    w2 = jax.random.uniform(kw2, (d, 1), jnp.float32, -bound, bound)
    b2 = jax.random.uniform(kb2, (1,), jnp.float32, -bound, bound)

    # Case 1: small f32 input consistent with the module (batch=2, seq=8, dmodel=32).
    batch, seq = 2, 8
    x = jax.random.normal(kx, (batch, seq, d), dtype=jnp.float32)
    stdv = noise_sampler_forward(x, w1, b1, w2, b2)
    jax.block_until_ready(stdv)
    assert stdv.shape == (batch, seq), stdv.shape
    ref_bf = _reference_forward_bf16_operands(x, w1, b1, w2, b2)
    ref_f32 = _reference_forward(x, w1, b1, w2, b2)
    assert jnp.allclose(stdv, ref_bf, atol=1e-5, rtol=1e-5), "mismatch (bf16-op ref)"
    assert jnp.allclose(stdv, ref_f32, atol=5e-2, rtol=5e-2), "mismatch (f32 ref)"

    # Case 2: bf16 activations (recommended production path: halves HBM read),
    # odd row count -> floor slab + tail epilogue, two grid tiles, ragged block.
    batch2, seq2 = 3, 347
    x_b = jax.random.normal(kx2, (batch2, seq2, d), dtype=jnp.float32).astype(jnp.bfloat16)
    stdv_b = noise_sampler_forward(x_b, w1, b1, w2, b2)
    jax.block_until_ready(stdv_b)
    assert stdv_b.shape == (batch2, seq2), stdv_b.shape
    assert stdv_b.dtype == jnp.bfloat16, stdv_b.dtype
    ref_b = _reference_forward_bf16_operands(x_b, w1, b1, w2, b2)
    err = jnp.max(jnp.abs(stdv_b.astype(jnp.float32) - ref_b))
    assert err < 2e-2, ("mismatch (bf16 case)", float(err))

    print("KERNEL_OK")
</pallas_src>

<mosaic_0001>
module attributes {stable_mosaic.version = 11 : i64} {
  func.func @kernel(%arg0: i32, %arg1: memref<128x128xf32, #tpu.memory_space<vmem>>, %arg2: memref<128x128xbf16, #tpu.memory_space<vmem>>, %arg3: memref<1x128xf32, #tpu.memory_space<vmem>>, %arg4: memref<4x128xf32, #tpu.memory_space<vmem>>, %arg5: memref<1xf32, #tpu.memory_space<smem>>, %arg6: memref<4x128xf32, #tpu.memory_space<vmem>>) attributes {dimension_semantics = [#tpu.dimension_semantics<parallel>], iteration_bounds = array<i64: 1>, scalar_prefetch = 0 : i64, scratch_operands = 0 : i64, tpu.core_type = #tpu.core_type<tc>, window_params = [{transform_indices = @transform_0, window_bounds = array<i64: 128, 128>}, {pipeline_mode = #tpu.pipeline_mode<synchronous>, transform_indices = @transform_1, window_bounds = array<i64: 128, 128>}, {pipeline_mode = #tpu.pipeline_mode<synchronous>, transform_indices = @transform_2, window_bounds = array<i64: 1, 128>}, {pipeline_mode = #tpu.pipeline_mode<synchronous>, transform_indices = @transform_3, window_bounds = array<i64: 4, 128>}, {transform_indices = @transform_4, window_bounds = array<i64: 1>}, {transform_indices = @transform_5, window_bounds = array<i64: 4, 128>}]} {
    %c0 = arith.constant 0 : index
    %c0_0 = arith.constant 0 : index
    %0 = vector.load %arg2[%c0, %c0_0] : memref<128x128xbf16, #tpu.memory_space<vmem>>, vector<128x128xbf16>
    %c0_1 = arith.constant 0 : index
    %c0_2 = arith.constant 0 : index
    %1 = vector.load %arg3[%c0_1, %c0_2] : memref<1x128xf32, #tpu.memory_space<vmem>>, vector<1x128xf32>
    %c0_3 = arith.constant 0 : index
    %c0_4 = arith.constant 0 : index
    %2 = vector.load %arg4[%c0_3, %c0_4] : memref<4x128xf32, #tpu.memory_space<vmem>>, vector<4x128xf32>
    %c0_5 = arith.constant 0 : index
    %3 = memref.load %arg5[%c0_5] : memref<1xf32, #tpu.memory_space<smem>>
    %c0_i32 = arith.constant 0 : i32
    %c128_i32 = arith.constant 128 : i32
    %4 = arith.muli %c0_i32, %c128_i32 : i32
    %5 = tpu.assume_multiple %4, 128 : i32
    %6 = arith.index_cast %5 : i32 to index
    %c0_6 = arith.constant 0 : index
    %7 = vector.load %arg1[%6, %c0_6] : memref<128x128xf32, #tpu.memory_space<vmem>>, vector<128x128xf32>
    %8 = arith.truncf %7 : vector<128x128xf32> to vector<128x128xbf16>
    %cst = arith.constant dense<0.000000e+00> : vector<128x128xf32>
    %9 = tpu.matmul %8, %0, %cst {dimension_numbers = #tpu.dot_dimension_numbers<[1], [0], [0], [1], [0, 0, 1, 1], [], []>} : vector<128x128xbf16>, vector<128x128xbf16>, vector<128x128xf32> -> vector<128x128xf32>
    %10 = vector.broadcast %1 : vector<1x128xf32> to vector<128x128xf32>
    %11 = arith.addf %9, %10 : vector<128x128xf32>
    %cst_7 = arith.constant 0.000000e+00 : f32
    %12 = vector.broadcast %cst_7 : f32 to vector<128x128xf32>
    %13 = arith.maximumf %11, %12 : vector<128x128xf32>
    %cst_8 = arith.constant dense<0.000000e+00> : vector<4x128xf32>
    %14 = tpu.matmul %2, %13, %cst_8 {dimension_numbers = #tpu.dot_dimension_numbers<[1], [1], [0], [0], [0, 0, 1, 0], [], []>} : vector<4x128xf32>, vector<128x128xf32>, vector<4x128xf32> -> vector<4x128xf32>
    %15 = vector.broadcast %3 : f32 to vector<4x128xf32>
    %16 = arith.addf %14, %15 : vector<4x128xf32>
    %cst_9 = arith.constant 2.000000e+01 : f32
    %17 = vector.broadcast %cst_9 : f32 to vector<4x128xf32>
    %18 = arith.cmpf ogt, %16, %17 : vector<4x128xf32>
    %19 = math.exp %16 : vector<4x128xf32>
    %20 = math.log1p %19 : vector<4x128xf32>
    %21 = arith.select %18, %16, %20 : vector<4x128xi1>, vector<4x128xf32>
    %c0_10 = arith.constant 0 : index
    %22 = arith.index_cast %5 : i32 to index
    %23 = vector.load %arg6[%c0_10, %22] : memref<4x128xf32, #tpu.memory_space<vmem>>, vector<4x128xf32>
    tpu.vector_store %arg6[%c0_10, %22], %21 {strides = array<i32>} : memref<4x128xf32, #tpu.memory_space<vmem>>, vector<4x128xf32>,
    %c1_i32 = arith.constant 1 : i32
    return
  }
  func.func @transform_0(%arg0: i32) -> (i32, i32) {
    %c0_i32 = arith.constant 0 : i32
    %c0_i32_0 = arith.constant 0 : i32
    return %arg0, %c0_i32 : i32, i32
  }
  func.func @transform_1(%arg0: i32) -> (i32, i32) {
    %c0_i32 = arith.constant 0 : i32
    %c0_i32_0 = arith.constant 0 : i32
    %c0_i32_1 = arith.constant 0 : i32
    return %c0_i32, %c0_i32_0 : i32, i32
  }
  func.func @transform_2(%arg0: i32) -> (i32, i32) {
    %c0_i32 = arith.constant 0 : i32
    %c0_i32_0 = arith.constant 0 : i32
    %c0_i32_1 = arith.constant 0 : i32
    return %c0_i32, %c0_i32_0 : i32, i32
  }
  func.func @transform_3(%arg0: i32) -> (i32, i32) {
    %c0_i32 = arith.constant 0 : i32
    %c0_i32_0 = arith.constant 0 : i32
    %c0_i32_1 = arith.constant 0 : i32
    return %c0_i32, %c0_i32_0 : i32, i32
  }
  func.func @transform_4(%arg0: i32) -> i32 {
    %c0_i32 = arith.constant 0 : i32
    %c0_i32_0 = arith.constant 0 : i32
    return %c0_i32 : i32
  }
  func.func @transform_5(%arg0: i32) -> (i32, i32) {
    %c0_i32 = arith.constant 0 : i32
    %c0_i32_0 = arith.constant 0 : i32
    return %c0_i32, %arg0 : i32, i32
  }
}

</mosaic_0001>

<bundles_post_ra>
// kernel: tile.9
= control target key start
LH: loop header
LB: loop body
LE: loop exit
PB: predicated region body
PF: predicated region fallthrough
CT: control target
= control target key end

     0   :  { %vm7_vm0 = vcmask 261120   ;;  %s37_s8 = smov 32   ;;  %s38_s9 = smov 64   ;;  %vm13_vm1 = vcmask 1048320   ;;  %vm19_vm2 = vcmask 785920   ;;  %vm25_vm3 = vcmask 523520   ;;  %s55_s0 = inlined_call_operand.vmem [shape: f32[4,32], index: 0, kind: input, shape index: {}]   ;;  %s56_s1 = inlined_call_operand.vmem [shape: f32[1,128], index: 1, kind: output, shape index: {}]  }
   0x1   :  { %v4_v0 = vld [vmem:[%s55_s0] sm:$0xf]  ;;  %s36_s0 = smov 96  }
   0x2   :  { %5 = vst [vmem:[#allocation1] sm:$0xf] %v4_v0 }
   0x9   :  { %v10_v1 = vld [vmem:[#allocation1 + $0x3] sm:$0x1]   ;;  %v22_v2 = vld [vmem:[#allocation1 + $0x1] sm:$0x1]   ;;  %v6_v3 = vld [vmem:[#allocation1] sm:$0x1]  }
   0xa   :  { %11 = vrot.lane.b32.xlu0 %v10_v1, %s36_s0  ;;  %23 = vrot.lane.b32.xlu1 %v22_v2, %s37_s8  ;;  %v16_v4 = vld [vmem:[#allocation1 + $0x2] sm:$0x1]   ;;  %8 = vst.msk [vmem:[#allocation0] sm:$0x1] %vm7_vm0, %v6_v3  }
   0xe   :  { %17 = vrot.lane.b32.xlu0 %v16_v4, %s38_s9 }
  0x7c   :  { %v12_v5 = vpop.permute.xlu0 %11   ;;  %v24_v6 = vpop.permute.xlu1 %23  }
  0x7d   :  { %14 = vst.msk [vmem:[#allocation0] sm:$0x1] %vm13_vm1, %v12_v5  }
  0x80   :  { %v18_v7 = vpop.permute.xlu0 %17  }
  0x81   :  { %20 = vst.msk [vmem:[#allocation0] sm:$0x1] %vm19_vm2, %v18_v7  }
  0x82   :  { %26 = vst.msk [vmem:[#allocation0] sm:$0x1] %vm25_vm3, %v24_v6  }
  0x89   :  { %v30_v8 = vld [vmem:[#allocation0] sm:$0x1] }
  0x8a   :  { %32 = vst [vmem:[%s56_s1] sm:$0x1] %v30_v8 }

// kernel: noise_sampler_forward.1
= control target key start
LH: loop header
LB: loop body
LE: loop exit
PB: predicated region body
PF: predicated region fallthrough
CT: control target
= control target key end

     0   :  { %v469_v32 = vmov 0.0|0.0   ;;  %vm470_vm0 = vmmov 0   ;;  %v471_v33 = vmov 0.0   ;;  %s594_s1 = inlined_call_operand.vmem [shape: bf16[128,128], index: 1, kind: input, shape index: {}]   ;;  %s595_s0 = inlined_call_operand.vmem [shape: f32[4,128], index: 0, kind: input, shape index: {}]   ;;  %s596_s2 = inlined_call_operand.vmem [shape: f32[1,128], index: 2, kind: input, shape index: {}]   ;;  %s597_s3 = inlined_call_operand.vmem [shape: f32[4,128], index: 3, kind: input, shape index: {}]   ;;  %s598_s4 = inlined_call_operand.<no memory space> [shape: f32[1], index: 4, kind: input, shape index: {}]   ;;  %s599_s5 = inlined_call_operand.vmem [shape: f32[4,4], index: 5, kind: output, shape index: {}]  }
   0x1   :  { %v457_v0 = vld [vmem:[%s594_s1] sm:$0xff]   ;;  %v458_v1 = vld [vmem:[%s594_s1 + $0x8] sm:$0xff]   ;;  %v459_v2 = vld [vmem:[%s594_s1 + $0x10] sm:$0xff]   ;;  %430 = vmatprep.subr.bf16.mxu1 %v469_v32  ;;  %427 = vmatprep.mubr.msk.f32.mxu1 %vm470_vm0, %v471_v33 }
   0x2   :  { %363 = vmatprep.subr.bf16.mxu0 %v457_v0  ;;  %v460_v3 = vld [vmem:[%s594_s1 + $0x18] sm:$0xff]   ;;  %v41_v4 = vld [vmem:[%s595_s0] sm:$0xff]  ;;  %v42_v5 = vld [vmem:[%s595_s0 + $0x8] sm:$0xff] }
   0x3   :  { %364 = vmatpush3.bf16.msra.mxu0 %v457_v0  ;;  %v57_v6 = vpack.c.bf16 %v42_v5, %v41_v4  ;;  %v461_v7 = vld [vmem:[%s594_s1 + $0x20] sm:$0xff]   ;;  %v462_v8 = vld [vmem:[%s594_s1 + $0x28] sm:$0xff]   ;;  %v463_v9 = vld [vmem:[%s594_s1 + $0x30] sm:$0xff]  }
   0x4   :  { %365 = vmatprep.subr.bf16.mxu0 %v458_v1  ;;  %v464_v10 = vld [vmem:[%s594_s1 + $0x38] sm:$0xff]   ;;  %v43_v11 = vld [vmem:[%s595_s0 + $0x10] sm:$0xff]  ;;  %v45_v13 = vld [vmem:[%s595_s0 + $0x20] sm:$0xff] }
   0x5   :  { %379 = vmatprep.mubr.bf16.mxu0 %v57_v6  ;;  %v44_v12 = vld [vmem:[%s595_s0 + $0x18] sm:$0xff]  ;;  %v46_v14 = vld [vmem:[%s595_s0 + $0x28] sm:$0xff]  ;;  %v47_v17 = vld [vmem:[%s595_s0 + $0x30] sm:$0xff] }
   0x6   :  { %v58_v15 = vpack.c.bf16 %v44_v12, %v43_v11  ;;  %v59_v16 = vpack.c.bf16 %v46_v14, %v45_v13  ;;  %v48_v18 = vld [vmem:[%s595_s0 + $0x38] sm:$0xff]  ;;  %v49_v19 = vld [vmem:[%s595_s0 + $0x40] sm:$0xff]  ;;  %v50_v20 = vld [vmem:[%s595_s0 + $0x48] sm:$0xff] }
   0x7   :  { %366 = vmatpush3.bf16.msra.mxu0 %v458_v1  ;;  %v60_v21 = vpack.c.bf16 %v48_v18, %v47_v17  ;;  %v61_v22 = vpack.c.bf16 %v50_v20, %v49_v19  ;;  %v51_v23 = vld [vmem:[%s595_s0 + $0x50] sm:$0xff]  ;;  %v52_v24 = vld [vmem:[%s595_s0 + $0x58] sm:$0xff]  ;;  %v53_v25 = vld [vmem:[%s595_s0 + $0x60] sm:$0xff] }
   0x8   :  { %367 = vmatprep.subr.bf16.mxu0 %v459_v2  ;;  %v54_v26 = vld [vmem:[%s595_s0 + $0x68] sm:$0xff]  ;;  %v62_v27 = vpack.c.bf16 %v52_v24, %v51_v23  ;;  %v55_v29 = vld [vmem:[%s595_s0 + $0x70] sm:$0xff]  ;;  %v56_v30 = vld [vmem:[%s595_s0 + $0x78] sm:$0xff] }
   0x9   :  { %v63_v28 = vpack.c.bf16 %v54_v26, %v53_v25  ;;  %v64_v31 = vpack.c.bf16 %v56_v30, %v55_v29  ;;  %v321_v34 = vld [vmem:[%s596_s2] ss:$0 sm:$0xff] }
   0xb   :  { %368 = vmatpush3.bf16.msra.mxu0 %v459_v2 }
   0xc   :  { %369 = vmatprep.subr.bf16.mxu0 %v460_v3 }
   0xf   :  { %370 = vmatpush3.bf16.msra.mxu0 %v460_v3 }
  0x10   :  { %371 = vmatprep.subr.bf16.mxu0 %v461_v7 }
  0x13   :  { %372 = vmatpush3.bf16.msra.mxu0 %v461_v7 }
  0x14   :  { %373 = vmatprep.subr.bf16.mxu0 %v462_v8 }
  0x17   :  { %374 = vmatpush3.bf16.msra.mxu0 %v462_v8 }
  0x18   :  { %375 = vmatprep.subr.bf16.mxu0 %v463_v9 }
  0x1b   :  { %376 = vmatpush3.bf16.msra.mxu0 %v463_v9 }
  0x1c   :  { %377 = vmatprep.subr.bf16.mxu0 %v464_v10 }
  0x1f   :  { %378 = vmatpush3.bf16.msra.mxu0 %v464_v10 }
  0x22   :  { %380 = vmatmul.mubr.bf16.vlgmr.msra.gmra.mrb[0].mxu0 %v58_v15 }
  0x23   :  { %383 = vmatprep.mubr.bf16.mxu0 %v59_v16 }
  0x2a   :  { %384 = vmatmul.mubr.bf16.gmra.mrb[4].mxu0 %v60_v21 }
  0x2b   :  { %387 = vmatprep.mubr.bf16.mxu0 %v61_v22 }
  0x32   :  { %388 = vmatmul.mubr.bf16.gmra.mrb[8].mxu0 %v62_v27  ;;  %v39_v27 = vld [vmem:[%s597_s3] sm:$0xf] }
  0x33   :  { %391 = vmatprep.mubr.bf16.mxu0 %v63_v28  ;;  %v232_v28 = vstv %s598_s4 }
  0x3a   :  { %392 = vmatmul.mubr.bf16.gmra.mrb[12].mxu0 %v64_v31 }
  0xf5   :  { %v381_v35 = vpop.f32.mrb[0].mxu0 }
  0xf6   :  { %v162_v36 = vadd.f32 %v381_v35, %v321_v34  ;;  %v153_v37 = vpop.f32.mrb[1].mxu0 }
  0xf7   :  { %v154_v38 = vadd.f32 %v321_v34, %v153_v37  ;;  %v382_v39 = vpop.f32.mrb[2].mxu0 }
  0xf8   :  { %v165_v40 = vadd.f32 %v382_v39, %v321_v34  ;;  %v156_v41 = vpop.f32.mrb[3].mxu0  ;;  %v218_v43 = vmax.f32 %v162_v36, 0.0 }
  0xf9   :  { %v157_v42 = vadd.f32 %v321_v34, %v156_v41  ;;  %v216_v45 = vmax.f32 %v154_v38, 0.0 }
  0xfa   :  { %v219_v44 = vmax.f32 %v165_v40, 0.0 }
  0xfb   :  { %v217_v46 = vmax.f32 %v157_v42, 0.0 }
  0xfc   :  { %v434_v47 = vpack.c.bf16 %v219_v44, %v218_v43 }
  0xfd   :  { %v431_v48 = vpack.c.bf16 %v217_v46, %v216_v45  ;;  %v385_v49 = vpop.f32.mrb[4].mxu0 }
  0xfe   :  { %v178_v50 = vadd.f32 %v385_v49, %v321_v34  ;;  %v169_v51 = vpop.f32.mrb[5].mxu0 }
  0xff   :  { %432 = vmatpush3.bf16.xpose.msra.mxu1 %v431_v48  ;;  %v170_v52 = vadd.f32 %v321_v34, %v169_v51  ;;  %v386_v53 = vpop.f32.mrb[6].mxu0 }
 0x100   :  { %v222_v54 = vmax.f32 %v178_v50, 0.0  ;;  %v181_v55 = vadd.f32 %v386_v53, %v321_v34  ;;  %v172_v56 = vpop.f32.mrb[7].mxu0  ;;  %433 = vmatprep.subr.bf16.mxu1 %v469_v32 }
 0x101   :  { %v220_v57 = vmax.f32 %v170_v52, 0.0  ;;  %v173_v58 = vadd.f32 %v321_v34, %v172_v56 }
 0x102   :  { %v223_v59 = vmax.f32 %v181_v55, 0.0 }
 0x103   :  { %v221_v60 = vmax.f32 %v173_v58, 0.0 }
 0x104   :  { %v440_v61 = vpack.c.bf16 %v223_v59, %v222_v54 }
 0x105   :  { %v437_v62 = vpack.c.bf16 %v221_v60, %v220_v57  ;;  %v389_v63 = vpop.f32.mrb[8].mxu0 }
 0x106   :  { %v194_v0 = vadd.f32 %v389_v63, %v321_v34  ;;  %v185_v1 = vpop.f32.mrb[9].mxu0 }
 0x107   :  { %435 = vmatpush3.bf16.xpose.msra.mxu1 %v434_v47  ;;  %v186_v2 = vadd.f32 %v321_v34, %v185_v1  ;;  %v390_v3 = vpop.f32.mrb[10].mxu0 }
 0x108   :  { %436 = vmatprep.subr.bf16.mxu1 %v469_v32  ;;  %v226_v4 = vmax.f32 %v194_v0, 0.0  ;;  %v197_v5 = vadd.f32 %v390_v3, %v321_v34  ;;  %v188_v6 = vpop.f32.mrb[11].mxu0 }
 0x109   :  { %v224_v7 = vmax.f32 %v186_v2, 0.0  ;;  %v189_v8 = vadd.f32 %v321_v34, %v188_v6 }
 0x10a   :  { %v227_v9 = vmax.f32 %v197_v5, 0.0 }
 0x10b   :  { %v225_v10 = vmax.f32 %v189_v8, 0.0 }
 0x10c   :  { %v446_v11 = vpack.c.bf16 %v227_v9, %v226_v4 }
 0x10d   :  { %v443_v12 = vpack.c.bf16 %v225_v10, %v224_v7  ;;  %v393_v13 = vpop.f32.mrb[12].mxu0 }
 0x10e   :  { %v210_v14 = vadd.f32 %v393_v13, %v321_v34  ;;  %v201_v15 = vpop.f32.mrb[13].mxu0 }
 0x10f   :  { %438 = vmatpush3.bf16.xpose.msra.mxu1 %v437_v62  ;;  %v202_v16 = vadd.f32 %v321_v34, %v201_v15  ;;  %v394_v17 = vpop.f32.mrb[14].mxu0 }
 0x110   :  { %439 = vmatprep.subr.bf16.mxu1 %v469_v32  ;;  %v230_v18 = vmax.f32 %v210_v14, 0.0  ;;  %v213_v19 = vadd.f32 %v394_v17, %v321_v34  ;;  %v204_v20 = vpop.f32.mrb[15].mxu0 }
 0x111   :  { %v228_v21 = vmax.f32 %v202_v16, 0.0  ;;  %v205_v22 = vadd.f32 %v321_v34, %v204_v20 }
 0x112   :  { %v231_v23 = vmax.f32 %v213_v19, 0.0 }
 0x113   :  { %v229_v24 = vmax.f32 %v205_v22, 0.0 }
 0x114   :  { %v452_v25 = vpack.c.bf16 %v231_v23, %v230_v18 }
 0x115   :  { %v449_v26 = vpack.c.bf16 %v229_v24, %v228_v21 }
 0x117   :  { %441 = vmatpush3.bf16.xpose.msra.mxu1 %v440_v61 }
 0x118   :  { %442 = vmatprep.subr.bf16.mxu1 %v469_v32 }
 0x11f   :  { %444 = vmatpush3.bf16.xpose.msra.mxu1 %v443_v12 }
 0x120   :  { %445 = vmatprep.subr.bf16.mxu1 %v469_v32 }
 0x127   :  { %447 = vmatpush3.bf16.xpose.msra.mxu1 %v446_v11 }
 0x128   :  { %448 = vmatprep.subr.bf16.mxu1 %v469_v32 }
 0x12f   :  { %450 = vmatpush3.bf16.xpose.msra.mxu1 %v449_v26 }
 0x130   :  { %451 = vmatprep.subr.bf16.mxu1 %v469_v32 }
 0x137   :  { %453 = vmatpush3.bf16.xpose.msra.mxu1 %v452_v25 }
 0x13e   :  { %428 = vmatmul.mubr.f32.vlgmr.msra.gmra.mrb[0].mxu1 %v39_v27 }
 0x211   :  { %v299_v29 = vpop.f32.mrb[0].mxu1 }
 0x212   :  { %v300_v30 = vadd.f32 %v299_v29, %v232_v28  ;;  %v429_v31 = vpop.f32.mrb[1].mxu1 }
 0x214   :  { %v304_v33 = vmul.f32 1.442695, %v300_v30  ;;  %vm303_vm2 = vcmp.gt.f32.partialorder %v300_v30, 20.0 }
 0x216   :  { %465 = vpow2.f32 %v304_v33 }
 0x220   :  { %v466_v34 = vpop.eup %465 }
 0x221   :  { %v306_v35 = vadd.f32 1.0, %v466_v34  ;;  %v309_v36 = vmul.f32 -0.5, %v466_v34  ;;  %v312_v37 = vand.u32 2147483647, %v466_v34 }
 0x223   :  { %467 = vlog2.f32 %v306_v35  ;;  %v310_v32 = vadd.f32 1.0, %v309_v36  ;;  %vm313_vm1 = vcmp.lt.f32.partialorder %v312_v37, 0.0004427343 }
 0x225   :  { %v311_v40 = vmul.f32 %v466_v34, %v310_v32 }
 0x22d   :  { %v468_v38 = vpop.eup %467 }
 0x22e   :  { %v308_v39 = vmul.f32 0.6931472, %v468_v38 }
 0x230   :  { %v314_v41 = vsel %vm313_vm1, %v311_v40, %v308_v39 }
 0x231   :  { %v315_v42 = vsel %vm303_vm2, %v300_v30, %v314_v41 }
 0x232   :  { %316 = vst [vmem:[%s599_s5] sm:$0xf] %v315_v42 }

</bundles_post_ra>
